<compile_context>
chip_gen: v7x
topology: tpu7x:2x2x1
jax: 0.10.0
libtpu: 0.0.40
codegen_flags: <defaults>
</compile_context>

<pallas_src>
import jax
import jax.numpy as jnp
import numpy as np
from jax.experimental import pallas as pl
from jax.experimental.pallas import tpu as pltpu

# Fixed SobelNet filter, baked into the kernel as compile-time constants.
_SOBEL = ((1.0, 0.0, -1.0),
          (2.0, 0.0, -2.0),
          (1.0, 0.0, -1.0))


def _accum(acc, tap, w):
    """acc += w * tap with w in {0, +/-1, +/-2}, strength-reduced at trace time."""
    if w == 0.0:
        return acc
    mag = tap if abs(w) == 1.0 else (tap + tap)      # Sobel taps are +/-1, +/-2
    if acc is None:
        return mag if w > 0 else -mag
    return acc + mag if w > 0 else acc - mag


def _sobelnet_kernel(xp_ref, bx_ref, by_ref, o_ref, s_ref):
    """Fused dual-branch Sobel for one batch image.

    xp_ref : VMEM (1, C, H+2, W+2)  zero-padded input block
    bx_ref : VMEM (1, C, 1, W)      convX bias (pre-shaped, broadcast over H)
    by_ref : VMEM (1, C, 1, W)      convY bias
    o_ref  : VMEM (1, C, H, W)      output block, NCHW order
    s_ref  : VMEM (1, H+2, W+2)     scratch: channel-summed padded image
    """
    C = xp_ref.shape[1]
    H, W = o_ref.shape[2], o_ref.shape[3]

    # Channel reduction hoisted out of the tap loop: identical filter for
    # every (out, in) pair => conv reduces to conv of the channel sum.
    s = xp_ref[:, 0]
    for c in range(1, C):
        s = s + xp_ref[:, c]
    s_ref[...] = s

    # 8-tap dual-branch accumulation; every shifted window is a pl.ds window
    # load on the padded scratch (dy = sublane offset, dx = lane offset), so
    # the shifts are addressing/XLU work instead of extra HBM traffic.
    gx = None        # convX(x) minus bias, (1, H, W)
    gy = None        # convY(x) minus bias, (1, H, W)
    for dy in range(3):
        for dx in range(3):
            wx = _SOBEL[dy][dx]            # X-branch weight
            wy = _SOBEL[dx][dy]            # Y-branch weight (= sobel.T)
            if wx == 0.0 and wy == 0.0:    # centre tap: zero in both branches
                continue
            win = s_ref[:, pl.ds(dy, H), pl.ds(dx, W)]
            gx = _accum(gx, win, wx)
            gy = _accum(gy, win, wy)

    # Fused bias + |.| + branch add on the full block, one unmasked store.
    gx = gx[:, None, :, :]                 # (1, 1, H, W) -> broadcast over C
    gy = gy[:, None, :, :]
    o_ref[...] = jnp.abs(gx + bx_ref[...]) + jnp.abs(gy + by_ref[...])


@jax.jit
def sobelnet_forward(x, bx, by):
    """SobelNet forward. x: (N, C, H, W); bx / by: (C,) conv biases.

    The 3x3 Sobel weights are fixed by the module definition and are baked
    into the kernel as +/-1, +/-2 constants; arbitrary (trained) Conv2d
    weights would need the general conv path instead of the channel-sum
    shortcut.
    """
    N, C, H, W = x.shape
    x = x.astype(jnp.float32)

    # Single zero-padded copy of the input — the only wrapper-side data prep.
    xp = jnp.pad(x, ((0, 0), (0, 0), (1, 1), (1, 1)))

    # Tiny pre-shaped bias blocks (1, C, 1, W); broadcast over H in-kernel.
    bx4 = jnp.broadcast_to(bx.astype(jnp.float32).reshape(1, C, 1, 1), (1, C, 1, W))
    by4 = jnp.broadcast_to(by.astype(jnp.float32).reshape(1, C, 1, 1), (1, C, 1, W))

    return pl.pallas_call(
        _sobelnet_kernel,
        out_shape=jax.ShapeDtypeStruct((N, C, H, W), jnp.float32),
        grid=(N,),
        in_specs=[
            pl.BlockSpec((1, C, H + 2, W + 2), lambda n: (n, 0, 0, 0)),
            pl.BlockSpec((1, C, 1, W), lambda n: (0, 0, 0, 0)),
            pl.BlockSpec((1, C, 1, W), lambda n: (0, 0, 0, 0)),
        ],
        out_specs=pl.BlockSpec((1, C, H, W), lambda n: (n, 0, 0, 0)),
        scratch_shapes=[pltpu.VMEM((1, H + 2, W + 2), jnp.float32)],
        compiler_params=pltpu.CompilerParams(
            dimension_semantics=("parallel",),       # v7x: shard batch over TCs
            vmem_limit_bytes=32 * 1024 * 1024,       # explicit scoped-VMEM limit
        ),
    )(xp, bx4, by4)


def _reference_forward(x, wx, wy, bx, by):
    """Pure-JAX reference (lax conv) mirroring PyTorch Conv2d semantics."""
    dn = jax.lax.conv_dimension_numbers(x.shape, wx.shape,
                                        ("NCHW", "OIHW", "NCHW"))
    cx = jax.lax.conv_general_dilated(x, wx, (1, 1), ((1, 1), (1, 1)),
                                      dimension_numbers=dn)
    cy = jax.lax.conv_general_dilated(x, wy, (1, 1), ((1, 1), (1, 1)),
                                      dimension_numbers=dn)
    cx = cx + bx[None, :, None, None]
    cy = cy + by[None, :, None, None]
    return jnp.abs(cx) + jnp.abs(cy)


if __name__ == "__main__":
    N, C, H, W = 2, 4, 16, 16

    key = jax.random.PRNGKey(0)
    k_x, k_bx, k_by = jax.random.split(key, 3)

    x = jax.random.normal(k_x, (N, C, H, W), dtype=jnp.float32)

    # Broadcast Sobel weights (matches PyTorch's copy_ broadcast) — used only
    # by the lax-conv reference; the kernel bakes them in as constants.
    sobel = np.array([[1., 0., -1.], [2., 0., -2.], [1., 0., -1.]], np.float32)
    wx = jnp.broadcast_to(jnp.asarray(sobel), (C, C, 3, 3)).astype(jnp.float32)
    wy = jnp.broadcast_to(jnp.asarray(sobel.T), (C, C, 3, 3)).astype(jnp.float32)

    # Guard (review concern): the channel-sum + baked-constant shortcut is
    # only valid for the module's fixed, broadcast Sobel/Sobel^T weights.
    assert np.array_equal(np.asarray(wx), np.broadcast_to(sobel, (C, C, 3, 3)))
    assert np.array_equal(np.asarray(wy), np.broadcast_to(sobel.T, (C, C, 3, 3)))

    # Biases: deterministic stand-in for PyTorch's default uniform init.
    bound = 1.0 / np.sqrt(C * 3 * 3)
    bx = jax.random.uniform(k_bx, (C,), jnp.float32, -bound, bound)
    by = jax.random.uniform(k_by, (C,), jnp.float32, -bound, bound)

    out = jax.block_until_ready(sobelnet_forward(x, bx, by))
    ref = jax.block_until_ready(_reference_forward(x, wx, wy, bx, by))

    assert out.shape == (N, C, H, W)
    assert np.allclose(np.asarray(out), np.asarray(ref), rtol=1e-4, atol=1e-4)

    print("KERNEL_OK")
</pallas_src>

<mosaic_0001>
module attributes {stable_mosaic.version = 11 : i64} {
  func.func @_sobelnet_kernel(%arg0: i32, %arg1: memref<1x4x18x18xf32, #tpu.memory_space<vmem>>, %arg2: memref<1x4x1x16xf32, #tpu.memory_space<vmem>>, %arg3: memref<1x4x1x16xf32, #tpu.memory_space<vmem>>, %arg4: memref<1x4x16x16xf32, #tpu.memory_space<vmem>>, %arg5: memref<1x18x18xf32, #tpu.memory_space<vmem>>) attributes {dimension_semantics = [#tpu.dimension_semantics<parallel>], iteration_bounds = array<i64: 2>, scalar_prefetch = 0 : i64, scratch_operands = 1 : i64, tpu.core_type = #tpu.core_type<tc>, window_params = [{transform_indices = @transform_0, window_bounds = array<i64: 1, 4, 18, 18>}, {pipeline_mode = #tpu.pipeline_mode<synchronous>, transform_indices = @transform_1, window_bounds = array<i64: 1, 4, 1, 16>}, {pipeline_mode = #tpu.pipeline_mode<synchronous>, transform_indices = @transform_2, window_bounds = array<i64: 1, 4, 1, 16>}, {transform_indices = @transform_3, window_bounds = array<i64: 1, 4, 16, 16>}]} {
    %c0 = arith.constant 0 : index
    %c0_0 = arith.constant 0 : index
    %c0_1 = arith.constant 0 : index
    %c0_2 = arith.constant 0 : index
    %0 = vector.load %arg1[%c0, %c0_0, %c0_1, %c0_2] : memref<1x4x18x18xf32, #tpu.memory_space<vmem>>, vector<1x1x18x18xf32>
    %1 = vector.shape_cast %0 : vector<1x1x18x18xf32> to vector<1x18x18xf32>
    %c0_3 = arith.constant 0 : index
    %c1 = arith.constant 1 : index
    %c0_4 = arith.constant 0 : index
    %c0_5 = arith.constant 0 : index
    %2 = vector.load %arg1[%c0_3, %c1, %c0_4, %c0_5] : memref<1x4x18x18xf32, #tpu.memory_space<vmem>>, vector<1x1x18x18xf32>
    %3 = vector.shape_cast %2 : vector<1x1x18x18xf32> to vector<1x18x18xf32>
    %4 = arith.addf %1, %3 : vector<1x18x18xf32>
    %c0_6 = arith.constant 0 : index
    %c2 = arith.constant 2 : index
    %c0_7 = arith.constant 0 : index
    %c0_8 = arith.constant 0 : index
    %5 = vector.load %arg1[%c0_6, %c2, %c0_7, %c0_8] : memref<1x4x18x18xf32, #tpu.memory_space<vmem>>, vector<1x1x18x18xf32>
    %6 = vector.shape_cast %5 : vector<1x1x18x18xf32> to vector<1x18x18xf32>
    %7 = arith.addf %4, %6 : vector<1x18x18xf32>
    %c0_9 = arith.constant 0 : index
    %c3 = arith.constant 3 : index
    %c0_10 = arith.constant 0 : index
    %c0_11 = arith.constant 0 : index
    %8 = vector.load %arg1[%c0_9, %c3, %c0_10, %c0_11] : memref<1x4x18x18xf32, #tpu.memory_space<vmem>>, vector<1x1x18x18xf32>
    %9 = vector.shape_cast %8 : vector<1x1x18x18xf32> to vector<1x18x18xf32>
    %10 = arith.addf %7, %9 : vector<1x18x18xf32>
    %c0_12 = arith.constant 0 : index
    %c0_13 = arith.constant 0 : index
    %c0_14 = arith.constant 0 : index
    %11 = vector.load %arg5[%c0_12, %c0_13, %c0_14] : memref<1x18x18xf32, #tpu.memory_space<vmem>>, vector<1x18x18xf32>
    tpu.vector_store %arg5[%c0_12, %c0_13, %c0_14], %10 {strides = array<i32>} : memref<1x18x18xf32, #tpu.memory_space<vmem>>, vector<1x18x18xf32>,
    %c0_15 = arith.constant 0 : index
    %c0_16 = arith.constant 0 : index
    %c0_17 = arith.constant 0 : index
    %12 = vector.load %arg5[%c0_15, %c0_16, %c0_17] : memref<1x18x18xf32, #tpu.memory_space<vmem>>, vector<1x16x16xf32>
    %c0_18 = arith.constant 0 : index
    %c0_19 = arith.constant 0 : index
    %c1_20 = arith.constant 1 : index
    %13 = vector.load %arg5[%c0_18, %c0_19, %c1_20] : memref<1x18x18xf32, #tpu.memory_space<vmem>>, vector<1x16x16xf32>
    %14 = arith.addf %13, %13 : vector<1x16x16xf32>
    %15 = arith.addf %12, %14 : vector<1x16x16xf32>
    %c0_21 = arith.constant 0 : index
    %c0_22 = arith.constant 0 : index
    %c2_23 = arith.constant 2 : index
    %16 = vector.load %arg5[%c0_21, %c0_22, %c2_23] : memref<1x18x18xf32, #tpu.memory_space<vmem>>, vector<1x16x16xf32>
    %17 = arith.subf %12, %16 : vector<1x16x16xf32>
    %18 = arith.addf %15, %16 : vector<1x16x16xf32>
    %c0_24 = arith.constant 0 : index
    %c1_25 = arith.constant 1 : index
    %c0_26 = arith.constant 0 : index
    %19 = vector.load %arg5[%c0_24, %c1_25, %c0_26] : memref<1x18x18xf32, #tpu.memory_space<vmem>>, vector<1x16x16xf32>
    %20 = arith.addf %19, %19 : vector<1x16x16xf32>
    %21 = arith.addf %17, %20 : vector<1x16x16xf32>
    %c0_27 = arith.constant 0 : index
    %c1_28 = arith.constant 1 : index
    %c2_29 = arith.constant 2 : index
    %22 = vector.load %arg5[%c0_27, %c1_28, %c2_29] : memref<1x18x18xf32, #tpu.memory_space<vmem>>, vector<1x16x16xf32>
    %23 = arith.addf %22, %22 : vector<1x16x16xf32>
    %24 = arith.subf %21, %23 : vector<1x16x16xf32>
    %c0_30 = arith.constant 0 : index
    %c2_31 = arith.constant 2 : index
    %c0_32 = arith.constant 0 : index
    %25 = vector.load %arg5[%c0_30, %c2_31, %c0_32] : memref<1x18x18xf32, #tpu.memory_space<vmem>>, vector<1x16x16xf32>
    %26 = arith.addf %24, %25 : vector<1x16x16xf32>
    %27 = arith.subf %18, %25 : vector<1x16x16xf32>
    %c0_33 = arith.constant 0 : index
    %c2_34 = arith.constant 2 : index
    %c1_35 = arith.constant 1 : index
    %28 = vector.load %arg5[%c0_33, %c2_34, %c1_35] : memref<1x18x18xf32, #tpu.memory_space<vmem>>, vector<1x16x16xf32>
    %29 = arith.addf %28, %28 : vector<1x16x16xf32>
    %30 = arith.subf %27, %29 : vector<1x16x16xf32>
    %c0_36 = arith.constant 0 : index
    %c2_37 = arith.constant 2 : index
    %c2_38 = arith.constant 2 : index
    %31 = vector.load %arg5[%c0_36, %c2_37, %c2_38] : memref<1x18x18xf32, #tpu.memory_space<vmem>>, vector<1x16x16xf32>
    %32 = arith.subf %26, %31 : vector<1x16x16xf32>
    %33 = arith.subf %30, %31 : vector<1x16x16xf32>
    %34 = vector.shape_cast %32 : vector<1x16x16xf32> to vector<1x1x16x16xf32>
    %35 = vector.shape_cast %33 : vector<1x16x16xf32> to vector<1x1x16x16xf32>
    %c0_39 = arith.constant 0 : index
    %c0_40 = arith.constant 0 : index
    %c0_41 = arith.constant 0 : index
    %c0_42 = arith.constant 0 : index
    %36 = vector.load %arg2[%c0_39, %c0_40, %c0_41, %c0_42] : memref<1x4x1x16xf32, #tpu.memory_space<vmem>>, vector<1x4x1x16xf32>
    %37 = vector.broadcast %34 : vector<1x1x16x16xf32> to vector<1x4x16x16xf32>
    %38 = vector.broadcast %36 : vector<1x4x1x16xf32> to vector<1x4x16x16xf32>
    %39 = arith.addf %37, %38 : vector<1x4x16x16xf32>
    %40 = math.absf %39 : vector<1x4x16x16xf32>
    %c0_43 = arith.constant 0 : index
    %c0_44 = arith.constant 0 : index
    %c0_45 = arith.constant 0 : index
    %c0_46 = arith.constant 0 : index
    %41 = vector.load %arg3[%c0_43, %c0_44, %c0_45, %c0_46] : memref<1x4x1x16xf32, #tpu.memory_space<vmem>>, vector<1x4x1x16xf32>
    %42 = vector.broadcast %35 : vector<1x1x16x16xf32> to vector<1x4x16x16xf32>
    %43 = vector.broadcast %41 : vector<1x4x1x16xf32> to vector<1x4x16x16xf32>
    %44 = arith.addf %42, %43 : vector<1x4x16x16xf32>
    %45 = math.absf %44 : vector<1x4x16x16xf32>
    %46 = arith.addf %40, %45 : vector<1x4x16x16xf32>
    %c0_47 = arith.constant 0 : index
    %c0_48 = arith.constant 0 : index
    %c0_49 = arith.constant 0 : index
    %c0_50 = arith.constant 0 : index
    %47 = vector.load %arg4[%c0_47, %c0_48, %c0_49, %c0_50] : memref<1x4x16x16xf32, #tpu.memory_space<vmem>>, vector<1x4x16x16xf32>
    tpu.vector_store %arg4[%c0_47, %c0_48, %c0_49, %c0_50], %46 {strides = array<i32>} : memref<1x4x16x16xf32, #tpu.memory_space<vmem>>, vector<1x4x16x16xf32>,
    return
  }
  func.func @transform_0(%arg0: i32) -> (i32, i32, i32, i32) {
    %c0_i32 = arith.constant 0 : i32
    %c0_i32_0 = arith.constant 0 : i32
    %c0_i32_1 = arith.constant 0 : i32
    %c0_i32_2 = arith.constant 0 : i32
    return %arg0, %c0_i32, %c0_i32_0, %c0_i32_1 : i32, i32, i32, i32
  }
  func.func @transform_1(%arg0: i32) -> (i32, i32, i32, i32) {
    %c0_i32 = arith.constant 0 : i32
    %c0_i32_0 = arith.constant 0 : i32
    %c0_i32_1 = arith.constant 0 : i32
    %c0_i32_2 = arith.constant 0 : i32
    %c0_i32_3 = arith.constant 0 : i32
    return %c0_i32, %c0_i32_0, %c0_i32_1, %c0_i32_2 : i32, i32, i32, i32
  }
  func.func @transform_2(%arg0: i32) -> (i32, i32, i32, i32) {
    %c0_i32 = arith.constant 0 : i32
    %c0_i32_0 = arith.constant 0 : i32
    %c0_i32_1 = arith.constant 0 : i32
    %c0_i32_2 = arith.constant 0 : i32
    %c0_i32_3 = arith.constant 0 : i32
    return %c0_i32, %c0_i32_0, %c0_i32_1, %c0_i32_2 : i32, i32, i32, i32
  }
  func.func @transform_3(%arg0: i32) -> (i32, i32, i32, i32) {
    %c0_i32 = arith.constant 0 : i32
    %c0_i32_0 = arith.constant 0 : i32
    %c0_i32_1 = arith.constant 0 : i32
    %c0_i32_2 = arith.constant 0 : i32
    return %arg0, %c0_i32, %c0_i32_0, %c0_i32_1 : i32, i32, i32, i32
  }
}

</mosaic_0001>

<bundles_post_ra>
// kernel: sobelnet_forward.1
= control target key start
LH: loop header
LB: loop body
LE: loop exit
PB: predicated region body
PF: predicated region fallthrough
CT: control target
= control target key end

     0   :  { %8 = vsyncpa [#allocation4], 0  ;;  %s752_s0 = inlined_call_operand.vmem [shape: f32[2,4,18,18], index: 0, kind: input, shape index: {}]   ;;  %s753_s1 = inlined_call_operand.vmem [shape: f32[1,4,1,16], index: 1, kind: input, shape index: {}]   ;;  %s754_s2 = inlined_call_operand.vmem [shape: f32[1,4,1,16], index: 2, kind: input, shape index: {}]   ;;  %s755_s3 = inlined_call_operand.hbm [shape: f32[2,4,16,16], index: 3, kind: output, shape index: {}]  }
   0x1   :  { %10 = vsyncpa [#allocation4 + $0x1], 0  ;;  %s613_s12 = smov 0   ;;  %s615_s13 = smov 0  }
   0x2   :  { %s617_s14 = smov 0   ;;  %s619_s15 = smov 0  }
   0x3 LB: > { %s634_s16 = sadd.s32 4294967295, %s586_s15   ;;  %s451_s17 = sadd.s32 4294967294, %s586_s15   ;;  %s586_s15 = sphi %s619_s15, %s761_s15   ;;  %s582_s14 = sphi %s617_s14, %s760_s14   ;;  %s578_s13 = sphi %s615_s13, %s759_s13   ;;  %s574_s12 = sphi %s613_s12, %s758_s12  }
   0x4   : > { %s638_s18 = sadd.s32 1, %s586_s15   ;;  %s91_s19 = sadd.s32 1, %s582_s14 }
   0x5   : > { %s88_s20 = ssub.s32 %s586_s15, %s638_s18  ;;  %p101_p0 = scmp.ne.s32.totalorder %s582_s14, %s578_s13 }
   0x6   : > { %p89_p1 = scmp.eq.s32.totalorder %s88_s20, 0  ;;  %p102_p2 = scmp.eq.s32.totalorder %s634_s16, 1 }
   0x7   : > { %p107_p3 = scmp.ne.s32.totalorder %s578_s13, %s574_s12  ;;  %p108_p4 = scmp.eq.s32.totalorder %s451_s17, 1 }
   0x8   : > { %s649_s21 = scalar_select %p89_p1, %s582_s14, %s91_s19  }
   0x9   : > { %p651_p5 = por %p102_p2, %p101_p0  ;;  %p655_p6 = por %p108_p4, %p107_p3 }
   0xa   : > { %p454_p7 = scmp.ge.s32.totalorder %s586_s15, 1  ;;  %p140_p8 = scmp.lt.s32.totalorder %s586_s15, 3 }
   0xc   : > { %p141_p9 = pnand %p454_p7, %p140_p8 }
   0xd   : > { %p164_p10 = scmp.lt.s32.totalorder (!%p141_p9), %s634_s16, 1  ;;  %vm193_vm0 = vcmask (!%p141_p9), 146432   ;;  %vm196_vm1 = vcmask (!%p141_p9), 140288   ;;  %s588_s29 = smov (!%p141_p9), 126   ;;  %v466_v54 = vld [vmem:[%s753_s1] ss:$0 sm:$0xff] (!%p141_p9) }
   0xe   : > { %144 = sbr.rel (%p141_p9) target bundleno = 203 (0xcb), region = 32  ;;  %s589_s30 = smov (!%p141_p9), 127   ;;  %v467_v55 = vld [vmem:[%s753_s1 + $0x1] ss:$0 sm:$0xff] (!%p141_p9)  ;;  %v468_v56 = vld [vmem:[%s753_s1 + $0x2] ss:$0 sm:$0xff] (!%p141_p9) }
   0xf   : > { %v469_v58 = vld [vmem:[%s753_s1 + $0x3] ss:$0 sm:$0xff] (!%p141_p9)  ;;  %v470_v59 = vld [vmem:[%s754_s2] ss:$0 sm:$0xff] (!%p141_p9)  ;;  %s161_s20 = sand.u32 (!%p141_p9), 1, %s578_s13   ;;  %vm366_vm2 = vcmask (!%p141_p9), 130048  }
  0x10   : > { %v471_v61 = vld [vmem:[%s754_s2 + $0x1] ss:$0 sm:$0xff] (!%p141_p9)  ;;  %v472_v62 = vld [vmem:[%s754_s2 + $0x2] ss:$0 sm:$0xff] (!%p141_p9)  ;;  %v473_v63 = vld [vmem:[%s754_s2 + $0x3] ss:$0 sm:$0xff] (!%p141_p9) }
  0x11   : > { %s479_s5 = sshll.u32 (!%p141_p9), %s634_s16, 10  ;;  %s590_s11 = smov (!%p141_p9), [#allocation3]  }
  0x12   : > { %s701_s9 = scalar_lea.hbm (!%p141_p9), %s755_s3, %s479_s5  ;;  %s528_s17 = sshll.u32 (!%p141_p9), %s590_s11, 4  ;;  %s529_s17 = int_to_ptr.vmem [resolvable:$false] %s528_s17 }
  0x13   : > { %s530_s19 = scalar_lea.vmem (!%p141_p9), %s529_s17, 2048 }
  0x15   : > { %s165_s24 = scalar_select %p164_p10, %s634_s16, 1 }
  0x16   : > { %s711_s16 = scalar_lea.sflag [#allocation4], %s161_s20 }
  0x17   : > { %s480_s25 = smul.u32 96, %s165_s24 }
  0x19   : > { %s168_s28 = scalar_lea.vmem %s752_s0, %s480_s25 }
  0x1a   : > { %v169_v0 = vld [vmem:[%s168_s28] sm:$0xff]  ;;  %v457_v1 = vld [vmem:[%s168_s28 + $0x18] sm:$0xff]  ;;  %v460_v2 = vld [vmem:[%s168_s28 + $0x30] sm:$0xff] }
  0x1b   : > { %v176_v3 = vadd.f32 %v457_v1, %v169_v0  ;;  %v170_v4 = vld [vmem:[%s168_s28 + $0x8] sm:$0xff]  ;;  %v458_v5 = vld [vmem:[%s168_s28 + $0x20] sm:$0xff]  ;;  %v461_v8 = vld [vmem:[%s168_s28 + $0x38] sm:$0xff] }
  0x1c   : > { %v463_v6 = vld [vmem:[%s168_s28 + $0x48] sm:$0xff]  ;;  %v177_v7 = vadd.f32 %v458_v5, %v170_v4  ;;  %v171_v9 = vld [vmem:[%s168_s28 + $0x10] sm:$0x3]  ;;  %v462_v13 = vld [vmem:[%s168_s28 + $0x40] sm:$0x3] }
  0x1d   : > { %v183_v10 = vadd.f32 %v460_v2, %v176_v3  ;;  %v464_v11 = vld [vmem:[%s168_s28 + $0x50] sm:$0xff]  ;;  %v459_v12 = vld [vmem:[%s168_s28 + $0x28] sm:$0x3]  ;;  %v465_v17 = vld [vmem:[%s168_s28 + $0x58] sm:$0x3] }
  0x1e   : > { %v184_v14 = vadd.f32 %v461_v8, %v177_v7  ;;  %v178_v15 = vadd.f32 %v459_v12, %v171_v9 }
  0x1f   : > { %v190_v16 = vadd.f32 %v463_v6, %v183_v10 }
  0x20   : > { %v191_v18 = vadd.f32 %v464_v11, %v184_v14  ;;  %v185_v19 = vadd.f32 %v462_v13, %v178_v15 }
  0x21   : > { %194 = vst.msk [vmem:[#allocation2] sm:$0xff] %vm193_vm0, %v190_v16 }
  0x22   : > { %195 = vst.msk [vmem:[#allocation2 + $0x8] sm:$0xff] %vm193_vm0, %v191_v18  ;;  %v192_v20 = vadd.f32 %v465_v17, %v185_v19 }
  0x24   : > { %197 = vst.msk [vmem:[#allocation2 + $0x10] sm:$0x3] %vm196_vm1, %v192_v20 }
  0x28   : > { %v198_v21 = vld [vmem:[#allocation2] sm:$0xff] }
  0x29   : > { %214 = vrot.lane.b32.xlu1 %v198_v21, %s588_s29  ;;  %v200_v22 = vadd.f32 %v198_v21, %v198_v21  ;;  %v199_v23 = vld [vmem:[#allocation2 + $0x8] sm:$0xff] }
  0x2a   : > { %v201_v24 = vadd.f32 %v199_v23, %v199_v23  ;;  %v224_v26 = vld [vmem:[#allocation2 + $0x1] sm:$0xff] }
  0x2b   : > { %204 = vrot.lane.b32.xlu0 %v200_v22, %s589_s30  ;;  %v225_v25 = vld [vmem:[#allocation2 + $0x9] sm:$0xff]  ;;  %v226_v29 = vadd.f32 %v224_v26, %v224_v26 }
  0x2c   : > { %v227_v27 = vadd.f32 %v225_v25, %v225_v25  ;;  %v241_v28 = vld [vmem:[#allocation2 + $0xa] sm:$0xff]  ;;  %v240_v30 = vld [vmem:[#allocation2 + $0x2] sm:$0xff] }
  0x2d   : > { %216 = vrot.lane.b32.xlu1 %v199_v23, %s588_s29  ;;  %v247_v31 = vadd.f32 %v241_v28, %v241_v28  ;;  %v246_v32 = vadd.f32 %v240_v30, %v240_v30 }
  0x2f   : > { %206 = vrot.lane.b32.xlu0 %v201_v24, %s589_s30 }
  0x31   : > { %234 = vrot.lane.b32.xlu1 %v227_v27, %s588_s29 }
  0x33   : > { %232 = vrot.lane.b32.xlu0 %v226_v29, %s588_s29 }
  0x35   : > { %252 = vrot.lane.b32.xlu1 %v247_v31, %s589_s30 }
  0x37   : > { %250 = vrot.lane.b32.xlu0 %v246_v32, %s589_s30  ;;  %s455_s30 = sshll.u32 %s161_s20, 6 }
  0x38   : > { %s163_s4 = scalar_lea.vmem [#allocation3], %s455_s30 }
  0x39   : > { %262 = vrot.lane.b32.xlu1 %v241_v28, %s588_s29  ;;  %s389_s6 = sshll.u32 %s163_s4, 4  ;;  %s703_s6 = int_to_ptr.vmem [resolvable:$true] %s389_s6 }
  0x3a   : > { %s524_s10 = scalar_lea.vmem %s703_s6, 1024  ;;  %p531_p0 = scmp.lt.s32.totalorder %s703_s6, %s529_s17 }
  0x3b   : > { %260 = vrot.lane.b32.xlu0 %v240_v30, %s588_s29  ;;  %p525_p11 = scmp.ne.s32.totalorder %s703_s6, %s524_s10  ;;  %p532_p1 = scmp.lt.s32.totalorder %s530_s19, %s524_s10 }
  0x3d   : > { %p526_p12 = pnand %p525_p11, %p651_p5  ;;  %p533_p2 = por %p532_p1, %p531_p0 }
  0x3f   : > { %p527_p13 = pneg %p526_p12 }
  0x41   : > { %p534_p3 = pnand %p533_p2, %p527_p13 }
  0x9b   : > { %v215_v33 = vpop.permute.xlu1 %214 }
  0x9c   : > { %v220_v40 = vsub.f32 %v198_v21, %v215_v33 }
  0x9d   : > { %v205_v34 = vpop.permute.xlu0 %204 }
  0x9e   : > { %v210_v41 = vadd.f32 %v205_v34, %v198_v21  ;;  %v228_v48 = vadd.f32 %v226_v29, %v220_v40 }
  0x9f   : > { %v217_v35 = vpop.permute.xlu1 %216 }
  0xa0   : > { %v221_v36 = vsub.f32 %v199_v23, %v217_v35  ;;  %v222_v47 = vadd.f32 %v215_v33, %v210_v41 }
  0xa1   : > { %v207_v37 = vpop.permute.xlu0 %206 }
  0xa2   : > { %v211_v38 = vadd.f32 %v207_v37, %v199_v23  ;;  %v229_v39 = vadd.f32 %v227_v27, %v221_v36  ;;  %v244_v57 = vsub.f32 %v222_v47, %v240_v30 }
  0xa3   : > { %v235_v42 = vpop.permute.xlu1 %234 }
  0xa4   : > { %v223_v43 = vadd.f32 %v217_v35, %v211_v38  ;;  %v239_v45 = vsub.f32 %v229_v39, %v235_v42 }
  0xa5   : > { %v233_v44 = vpop.permute.xlu0 %232 }
  0xa6   : > { %v245_v46 = vsub.f32 %v223_v43, %v241_v28  ;;  %v238_v50 = vsub.f32 %v228_v48, %v233_v44  ;;  %v243_v53 = vadd.f32 %v241_v28, %v239_v45 }
  0xa7   : > { %v253_v49 = vpop.permute.xlu1 %252 }
  0xa8   : > { %v257_v52 = vsub.f32 %v245_v46, %v253_v49  ;;  %v242_v3 = vadd.f32 %v240_v30, %v238_v50 }
  0xa9   : > { %v251_v51 = vpop.permute.xlu0 %250 }
  0xaa   : > { %v256_v2 = vsub.f32 %v244_v57, %v251_v51 }
  0xab   : > { %v263_v60 = vpop.permute.xlu1 %262 }
  0xac   : > { %v267_v0 = vsub.f32 %v243_v53, %v263_v60  ;;  %v269_v1 = vsub.f32 %v257_v52, %v263_v60 }
  0xad   : > { %v261_v4 = vpop.permute.xlu0 %260 }
  0xae   : > { %v299_v5 = vadd.f32 %v466_v54, %v267_v0  ;;  %v301_v6 = vadd.f32 %v467_v55, %v267_v0  ;;  %v303_v7 = vadd.f32 %v468_v56, %v267_v0  ;;  %v305_v8 = vadd.f32 %v469_v58, %v267_v0 }
  0xaf   : > { %v343_v9 = vadd.f32 %v470_v59, %v269_v1  ;;  %v345_v10 = vadd.f32 %v471_v61, %v269_v1  ;;  %v347_v11 = vadd.f32 %v472_v62, %v269_v1  ;;  %v349_v12 = vadd.f32 %v473_v63, %v269_v1 }
  0xb0   : > { %v307_v13 = vand.u32 2147483647, %v299_v5  ;;  %v309_v14 = vand.u32 2147483647, %v301_v6  ;;  %v311_v15 = vand.u32 2147483647, %v303_v7  ;;  %v266_v16 = vsub.f32 %v242_v3, %v261_v4 }
  0xb1   : > { %v313_v17 = vand.u32 2147483647, %v305_v8  ;;  %v351_v18 = vand.u32 2147483647, %v343_v9  ;;  %v353_v19 = vand.u32 2147483647, %v345_v10  ;;  %v268_v20 = vsub.f32 %v256_v2, %v261_v4 }
  0xb2   : > { %v355_v21 = vand.u32 2147483647, %v347_v11  ;;  %v357_v22 = vand.u32 2147483647, %v349_v12  ;;  %v298_v23 = vadd.f32 %v466_v54, %v266_v16  ;;  %v300_v24 = vadd.f32 %v467_v55, %v266_v16 }
  0xb3   : > { %v359_v25 = vadd.f32 %v351_v18, %v307_v13  ;;  %v361_v26 = vadd.f32 %v353_v19, %v309_v14  ;;  %v302_v27 = vadd.f32 %v468_v56, %v266_v16  ;;  %v304_v28 = vadd.f32 %v469_v58, %v266_v16 }
  0xb4   : > { %v363_v29 = vadd.f32 %v355_v21, %v311_v15  ;;  %v365_v30 = vadd.f32 %v357_v22, %v313_v17  ;;  %v306_v31 = vand.u32 2147483647, %v298_v23  ;;  %v308_v32 = vand.u32 2147483647, %v300_v24 }
  0xb5   : > { %368 = vst.msk [vmem:[%s163_s4 + $0x8] sm:$0xff] %vm366_vm2, %v359_v25  ;;  %370 = vst.msk [vmem:[%s163_s4 + $0x18] sm:$0xff] %vm366_vm2, %v361_v26  ;;  %v342_v33 = vadd.f32 %v470_v59, %v268_v20  ;;  %v344_v34 = vadd.f32 %v471_v61, %v268_v20  ;;  %v310_v35 = vand.u32 2147483647, %v302_v27  ;;  %v312_v36 = vand.u32 2147483647, %v304_v28 }
  0xb6   : > { %372 = vst.msk [vmem:[%s163_s4 + $0x28] sm:$0xff] %vm366_vm2, %v363_v29  ;;  %374 = vst.msk [vmem:[%s163_s4 + $0x38] sm:$0xff] %vm366_vm2, %v365_v30  ;;  %v346_v37 = vadd.f32 %v472_v62, %v268_v20  ;;  %v348_v38 = vadd.f32 %v473_v63, %v268_v20 }
  0xb7   : > { %v350_v39 = vand.u32 2147483647, %v342_v33  ;;  %v352_v40 = vand.u32 2147483647, %v344_v34 }
  0xb8   : > { %v354_v41 = vand.u32 2147483647, %v346_v37  ;;  %v356_v42 = vand.u32 2147483647, %v348_v38 }
  0xb9   : > { %v358_v43 = vadd.f32 %v350_v39, %v306_v31  ;;  %v360_v44 = vadd.f32 %v352_v40, %v308_v32 }
  0xba   : > { %v362_v45 = vadd.f32 %v354_v41, %v310_v35  ;;  %v364_v46 = vadd.f32 %v356_v42, %v312_v36 }
  0xbb   : > { %367 = vst.msk [vmem:[%s163_s4] sm:$0xff] %vm366_vm2, %v358_v43  ;;  %369 = vst.msk [vmem:[%s163_s4 + $0x10] sm:$0xff] %vm366_vm2, %v360_v44 }
  0xbc   : > { %371 = vst.msk [vmem:[%s163_s4 + $0x20] sm:$0xff] %vm366_vm2, %v362_v45  ;;  %373 = vst.msk [vmem:[%s163_s4 + $0x30] sm:$0xff] %vm366_vm2, %v364_v46 }
  0xbd   : > { %537 = shalt.err (!%p534_p3)
}
  0xbe   : > { %s538_s20 = scalar_lea.hbm %s701_s9, 1024  ;;  %s542_s26 = scalar_lea.hbm %s755_s3, 2048 }
  0xbf   : > { %p539_p4 = scmp.ne.s32.totalorder %s701_s9, %s538_s20  ;;  %p543_p9 = scmp.lt.u32.totalorder %s701_s9, %s755_s3 }
  0xc0   : > { %p544_p10 = scmp.lt.u32.totalorder %s542_s26, %s538_s20  ;;  %p546_p12 = scmp.lt.u32.totalorder %s538_s20, %s701_s9 }
  0xc1   : > { %p540_p7 = pnand %p539_p4, %p651_p5 }
  0xc2   : > { %p545_p11 = por %p544_p10, %p543_p9 }
  0xc3   : > { %p541_p8 = pneg %p540_p7 }
  0xc4   : > { %p547_p13 = por %p546_p12, %p545_p11 }
  0xc6   : > { %p548_p0 = pnand %p547_p13, %p541_p8 }
  0xc8   : > { %551 = shalt.err (!%p548_p0)
}
  0xc9   : > { %s591_s29 = smov 128   ;;  %s592_s30 = smov 8  }
  0xca   : > { %481 = dma.vmem_to_hbm [thread:$0]  (%p651_p5), %s703_s6, 1024, %s701_s9, %s711_s16, %s591_s29, %s591_s29, %s592_s30  }
  0xcb PF: > { %p487_p1 = scmp.ge.s32.totalorder %s586_s15, 2  ;;  %s404_s4 = sand.u32 1, %s574_s12  }
  0xcc   : > { %s405_s5 = scalar_lea.sflag [#allocation4], %s404_s4 }
  0xcd   : > { %p484_p2 = pnand %p487_p1, %p655_p6 }
  0xcf   : > { %569 = dma.done.wait (!%p484_p2), %s405_s5, 1024  }
  0xd0   : > { %571 = vsyncadd (!%p484_p2), %s405_s5, 4294966272  ;;  %p13_p3 = scmp.ge.s32.totalorder %s638_s18, 4   ;;  %s758_s12 = smov %s578_s13 }
  0xd1   : > { %s759_s13 = smov %s582_s14  ;;  %s760_s14 = smov %s649_s21 }
  0xd2   : > { %s761_s15 = smov %s638_s18  ;;  %15 = sbr.rel (!%p13_p3) target bundleno = 3 (0x3), region = 70 }
  0xd9   :  { %410 = vsyncpa [#allocation4], 1 }
  0xda   :  { %412 = vsyncpa [#allocation4 + $0x1], 1 }

</bundles_post_ra>
